<compile_context>
chip_gen: v7x
topology: tpu7x:2x2x1
jax: 0.10.0
libtpu: 0.0.40
codegen_flags: <defaults>
</compile_context>

<pallas_src>
import functools

import jax
import jax.numpy as jnp
from jax import lax
from jax.experimental import pallas as pl
from jax.experimental.pallas import tpu as pltpu


def _round_up(x, m):
    return ((x + m - 1) // m) * m


def _bn_scale_shift(p, eps=1e-5):
    scale = p["gamma"] / jnp.sqrt(p["var"] + eps)
    shift = (p["b"] - p["mean"]) * scale + p["beta"]
    return scale, shift


# ------------------------------ Pallas kernels ------------------------------ #
def _conv1_kernel(lhs_ref, w_ref, o_ref):
    """Fused stem: one matmul (patch rows x folded weights) + ReLU.

    lhs_ref: (RP, K1)      bf16  5x5 patches + border-indicator columns
    w_ref:   (K1, 4*C1)    bf16  conv1 weights with BN scale folded; the four
                                 indicator rows carry the folded shift
    o_ref:   (RP, 4*C1)    bf16  phase-packed slab tile consumed by conv2
    """
    acc = jnp.dot(lhs_ref[...], w_ref[...], preferred_element_type=jnp.float32)
    o_ref[...] = jnp.maximum(acc, 0.0).astype(o_ref.dtype)


def _conv2_kernel(x_ref, w_ref, s_ref, o_ref, acc_ref, *, tm, ws2):
    """Stride-2 3x3 conv as 4 static shifted taps + folded BN + ReLU.

    x_ref:  (RP, 4*C1)      bf16  slab tile (halo rows baked into the layout)
    w_ref:  (4, 4*C1, Cout) bf16  grouped conv weights (BN scale folded)
    s_ref:  (1, Cout)       f32   folded shift = (bias - mean)*scale + beta
    o_ref:  (TM, Cout)            output tile
    acc_ref:(TM, Cout)      f32   VMEM scratch accumulator (MXU-side accumulate)
    """
    offs = (0, 1, ws2, ws2 + 1)
    acc_ref[...] = jnp.dot(x_ref[pl.ds(offs[0], tm), :], w_ref[0],
                           preferred_element_type=jnp.float32)
    for t in range(1, 4):
        acc_ref[...] += jnp.dot(x_ref[pl.ds(offs[t], tm), :], w_ref[t],
                                preferred_element_type=jnp.float32)
    o_ref[...] = jnp.maximum(acc_ref[...] + s_ref[...], 0.0).astype(o_ref.dtype)


# --------------------------- host-side weight prep -------------------------- #
def _build_conv1_weight(p1, eps=1e-5):
    """(K1, 4*C1) matmul weight mapping a flattened 5x5xCin patch (+4 indicator
    columns) to the four phase-packed conv1 outputs of one super-pixel."""
    w = p1["w"].astype(jnp.float32)                      # (C1, Cin, 3, 3)
    c1, cin, kh, kw = w.shape
    assert kh == 3 and kw == 3, "kernel specialised to k=3, stride=2, pad=1"
    scale, shift = _bn_scale_shift(p1, eps)
    w_t = jnp.transpose(w, (2, 3, 1, 0)) * scale         # (3, 3, Cin, C1)

    big = jnp.zeros((5, 5, cin, 4, c1), jnp.float32)     # (p, q, ci, phase, co)
    for pi in range(2):
        for pj in range(2):
            for di in range(3):
                for dj in range(3):
                    big = big.at[2 * pi + di, 2 * pj + dj, :, 2 * pi + pj, :
                                 ].set(w_t[di, dj])
    big = big.reshape(25 * cin, 4 * c1)

    # Indicator rows: row g adds the folded shift only to phase g's channels
    # (and only where the host sets that indicator column to 1 = non-border).
    ind = jnp.zeros((4, 4, c1), jnp.float32)
    for g in range(4):
        ind = ind.at[g, g, :].set(shift)
    big = jnp.concatenate([big, ind.reshape(4, 4 * c1)], axis=0)

    k_raw = 25 * cin + 4
    k1 = _round_up(k_raw, 16)
    big = jnp.pad(big, ((0, k1 - k_raw), (0, 0)))
    return big.astype(jnp.bfloat16), k1


def _build_conv2_weight(p2, eps=1e-5):
    """Regroup conv2's 3x3 stride-2 taps as a 2x2 stride-1 conv over the
    phase-packed slab channels; fold bias + eval BN into weights/shift."""
    w = p2["w"].astype(jnp.float32)                      # (Cout, C1, 3, 3)
    cout, c1, _, _ = w.shape
    scale, shift = _bn_scale_shift(p2, eps)
    w_t = jnp.transpose(w, (2, 3, 1, 0)) * scale         # (3, 3, C1, Cout)

    wg = jnp.zeros((2, 2, 2, 2, c1, cout), jnp.float32)  # (oi, oj, pi, pj, c, co)
    for oi in range(2):
        for oj in range(2):
            for pi in range(2):
                for pj in range(2):
                    di, dj = 2 * oi + pi, 2 * oj + pj
                    if di < 3 and dj < 3:
                        wg = wg.at[oi, oj, pi, pj].set(w_t[di, dj])
    wg = wg.reshape(4, 4 * c1, cout).astype(jnp.bfloat16)
    return wg, shift.reshape(1, cout).astype(jnp.float32)


def _build_conv1_lhs(x_nhwc, hs2, ws2, n_tiles, tm, rp, k1):
    """Per-super-pixel 5x5 patches + indicator columns, gathered into the
    (B, n_tiles, RP, K1) tiled layout (halo rows duplicated)."""
    B, H, W, cin = x_nhwc.shape
    x = x_nhwc.astype(jnp.bfloat16)
    # P2[y, x] = img[y-3, x-3]; super-pixel (s, t) reads P2[4s:4s+5, 4t:4t+5].
    p2 = jnp.pad(x, ((0, 0), (3, 2), (3, 2), (0, 0)))
    cols = []
    for p in range(5):
        for q in range(5):
            cols.append(p2[:, p:p + 4 * (hs2 - 1) + 1:4,
                           q:q + 4 * (ws2 - 1) + 1:4, :])
    g = jnp.concatenate(cols, axis=-1)                   # (B, hs2, ws2, 25*Cin)

    # Border-indicator columns: 0 where that phase is conv2's zero padding
    # (top / left border phases read only padding, so zeroing the shift makes
    #  them exactly 0; bottom / right padding phases hit zero conv2 weights).
    s_idx = jnp.arange(hs2)[:, None]
    t_idx = jnp.arange(ws2)[None, :]
    inds = []
    for pi in range(2):
        for pj in range(2):
            b_s = (s_idx == 0) if pi == 0 else jnp.zeros((hs2, 1), bool)
            b_t = (t_idx == 0) if pj == 0 else jnp.zeros((1, ws2), bool)
            inds.append(jnp.where(b_s | b_t, 0.0, 1.0).astype(jnp.bfloat16))
    ind = jnp.broadcast_to(jnp.stack(inds, axis=-1)[None], (B, hs2, ws2, 4))

    g = jnp.concatenate([g, ind], axis=-1)               # (B, hs2, ws2, 25*Cin+4)
    g = jnp.pad(g, ((0, 0), (0, 0), (0, 0), (0, k1 - (25 * cin + 4))))
    g = g.reshape(B, hs2 * ws2, k1)

    # Tiled row layout with duplicated halo: row (i, r) = flat slab row i*tm+r.
    idx = jnp.arange(n_tiles)[:, None] * tm + jnp.arange(rp)[None, :]
    idx = jnp.clip(idx, 0, hs2 * ws2 - 1)
    return jnp.take(g, idx, axis=1)                      # (B, n_tiles, rp, k1)


# -------------------------------- forward ----------------------------------- #
def patch_embed_forward(x_nchw, params, *, tm_max=256):
    """PatchEmbed forward; NCHW in / NCHW out (matches the PyTorch module)."""
    B, cin, H, W = x_nchw.shape
    assert H % 4 == 0 and W % 4 == 0, "spatial dims must be divisible by 4"
    c1 = params["conv1"]["w"].shape[0]
    cout = params["conv2"]["w"].shape[0]
    c4 = 4 * c1

    ho1, wo1 = H // 2, W // 2                 # conv1 output spatial
    hs2, ws2 = ho1 // 2 + 1, wo1 // 2 + 1     # space-to-depth grid (padded conv1)
    ho2, wo2 = H // 4, W // 4                 # conv2 output spatial

    # conv2 row tiling over flat slab rows (width ws2; last column is junk).
    m0 = ho2 * ws2
    tm = min(tm_max, _round_up(m0, 8))
    m_pad = _round_up(m0, tm)
    n_tiles = m_pad // tm
    rp = _round_up(tm + ws2 + 1, 8)           # slab rows per tile incl. halo

    # ---- conv1: 5x5/stride-4 patch matmul, emits conv2's slab layout ----
    w1, k1 = _build_conv1_weight(params["conv1"])
    x_nhwc = jnp.transpose(x_nchw, (0, 2, 3, 1))
    lhs = _build_conv1_lhs(x_nhwc, hs2, ws2, n_tiles, tm, rp, k1)

    slab = pl.pallas_call(
        _conv1_kernel,
        out_shape=jax.ShapeDtypeStruct((B, n_tiles, rp, c4), jnp.bfloat16),
        grid=(B, n_tiles),
        in_specs=[
            pl.BlockSpec((None, None, rp, k1), lambda b, i: (b, i, 0, 0)),
            pl.BlockSpec((k1, c4), lambda b, i: (0, 0)),
        ],
        out_specs=pl.BlockSpec((None, None, rp, c4), lambda b, i: (b, i, 0, 0)),
        compiler_params=pltpu.CompilerParams(
            dimension_semantics=("parallel", "parallel")),
    )(lhs, w1)

    # ---- conv2: 4 static shifted taps, f32 VMEM scratch accumulation ----
    w2, shift2 = _build_conv2_weight(params["conv2"])
    kernel = functools.partial(_conv2_kernel, tm=tm, ws2=ws2)
    out_flat = pl.pallas_call(
        kernel,
        out_shape=jax.ShapeDtypeStruct((B, m_pad, cout), jnp.float32),
        grid=(B, n_tiles),
        in_specs=[
            pl.BlockSpec((None, None, rp, c4), lambda b, i: (b, i, 0, 0)),
            pl.BlockSpec((4, c4, cout), lambda b, i: (0, 0, 0)),
            pl.BlockSpec((1, cout), lambda b, i: (0, 0)),
        ],
        out_specs=pl.BlockSpec((None, tm, cout), lambda b, i: (b, i, 0)),
        scratch_shapes=[pltpu.VMEM((tm, cout), jnp.float32)],
        compiler_params=pltpu.CompilerParams(
            dimension_semantics=("parallel", "parallel")),
    )(slab, w2, shift2)

    # Drop the junk column / padded rows (small, final-output-sized pass).
    out = out_flat[:, :m0, :].reshape(B, ho2, ws2, cout)[:, :, :wo2, :]
    return jnp.transpose(out, (0, 3, 1, 2))


# ------------------------- pure-XLA reference path -------------------------- #
def _conv_block_reference(x_nhwc, params, eps=1e-5):
    w_hwio = jnp.transpose(params["w"], (2, 3, 1, 0)).astype(jnp.bfloat16)
    y = lax.conv_general_dilated(
        x_nhwc.astype(jnp.bfloat16), w_hwio, window_strides=(2, 2),
        padding=((1, 1), (1, 1)), dimension_numbers=("NHWC", "HWIO", "NHWC"),
        preferred_element_type=jnp.float32)
    y = y + params["b"]
    scale = params["gamma"] / jnp.sqrt(params["var"] + eps)
    y = (y - params["mean"]) * scale + params["beta"]
    return jnp.maximum(y, 0.0)


def patch_embed_reference(x_nchw, params):
    x = jnp.transpose(x_nchw, (0, 2, 3, 1))
    x = _conv_block_reference(x, params["conv1"]).astype(jnp.bfloat16)
    x = _conv_block_reference(x, params["conv2"])
    return jnp.transpose(x, (0, 3, 1, 2))


# --------------------------------- params ----------------------------------- #
def init_conv_block_params(key, in_ch, out_ch, k):
    ks = jax.random.split(key, 6)
    return {
        "w": 0.02 * jax.random.normal(ks[0], (out_ch, in_ch, k, k), jnp.float32),
        "b": 0.01 * jax.random.normal(ks[1], (out_ch,), jnp.float32),
        "gamma": 1.0 + 0.1 * jax.random.normal(ks[2], (out_ch,), jnp.float32),
        "beta": 0.05 * jax.random.normal(ks[3], (out_ch,), jnp.float32),
        "mean": 0.05 * jax.random.normal(ks[4], (out_ch,), jnp.float32),
        "var": 1.0 + 0.5 * jax.random.uniform(ks[5], (out_ch,), jnp.float32),
    }


# ----------------------------------- main ------------------------------------ #
if __name__ == "__main__":
    in_chans = 3
    embed_dim = 16          # small for test (module default 96)
    patch_size = 4
    B, H, W = 2, 16, 16

    key = jax.random.PRNGKey(0)
    k_in, k1, k2 = jax.random.split(key, 3)
    x = jax.random.normal(k_in, (B, in_chans, H, W), jnp.float32)

    kernel_size = patch_size // 2 + 1   # 3
    params = {
        "conv1": init_conv_block_params(k1, in_chans, embed_dim // 2, kernel_size),
        "conv2": init_conv_block_params(k2, embed_dim // 2, embed_dim, kernel_size),
    }

    out = jax.jit(patch_embed_forward)(x, params)
    out = jax.block_until_ready(out)

    # Two stride-2 convs: 16 -> 8 -> 4 spatial, embed_dim channels.
    assert out.shape == (B, embed_dim, H // 4, W // 4), out.shape
    assert out.dtype == jnp.float32

    # Numerical cross-check against an XLA conv reference (same bf16 casts).
    ref = jax.jit(patch_embed_reference)(x, params)
    ref = jax.block_until_ready(ref)
    max_err = float(jnp.max(jnp.abs(out - ref.astype(jnp.float32))))
    assert max_err < 1e-2, f"max |pallas - reference| = {max_err}"

    print("KERNEL_OK")
</pallas_src>

<mosaic_0001>
module attributes {stable_mosaic.version = 11 : i64} {
  func.func @_conv1_kernel(%arg0: i32, %arg1: i32, %arg2: memref<1x1x32x80xbf16, #tpu.memory_space<vmem>>, %arg3: memref<80x32xbf16, #tpu.memory_space<vmem>>, %arg4: memref<1x1x32x32xbf16, #tpu.memory_space<vmem>>) attributes {dimension_semantics = [#tpu.dimension_semantics<parallel>, #tpu.dimension_semantics<parallel>], iteration_bounds = array<i64: 2, 1>, scalar_prefetch = 0 : i64, scratch_operands = 0 : i64, tpu.core_type = #tpu.core_type<tc>, window_params = [{transform_indices = @transform_0, window_bounds = array<i64: 1, 1, 32, 80>}, {pipeline_mode = #tpu.pipeline_mode<synchronous>, transform_indices = @transform_1, window_bounds = array<i64: 80, 32>}, {transform_indices = @transform_2, window_bounds = array<i64: 1, 1, 32, 32>}]} {
    %c0 = arith.constant 0 : index
    %c0_0 = arith.constant 0 : index
    %c0_1 = arith.constant 0 : index
    %c0_2 = arith.constant 0 : index
    %0 = vector.load %arg2[%c0, %c0_0, %c0_1, %c0_2] : memref<1x1x32x80xbf16, #tpu.memory_space<vmem>>, vector<1x1x32x80xbf16>
    %1 = vector.shape_cast %0 : vector<1x1x32x80xbf16> to vector<32x80xbf16>
    %c0_3 = arith.constant 0 : index
    %c0_4 = arith.constant 0 : index
    %2 = vector.load %arg3[%c0_3, %c0_4] : memref<80x32xbf16, #tpu.memory_space<vmem>>, vector<80x32xbf16>
    %cst = arith.constant dense<0.000000e+00> : vector<32x32xf32>
    %3 = tpu.matmul %1, %2, %cst {dimension_numbers = #tpu.dot_dimension_numbers<[1], [0], [0], [1], [0, 0, 1, 1], [], []>} : vector<32x80xbf16>, vector<80x32xbf16>, vector<32x32xf32> -> vector<32x32xf32>
    %cst_5 = arith.constant 0.000000e+00 : f32
    %4 = vector.broadcast %cst_5 : f32 to vector<32x32xf32>
    %5 = arith.maximumf %3, %4 : vector<32x32xf32>
    %6 = arith.truncf %5 : vector<32x32xf32> to vector<32x32xbf16>
    %c0_6 = arith.constant 0 : index
    %c0_7 = arith.constant 0 : index
    %c0_8 = arith.constant 0 : index
    %c0_9 = arith.constant 0 : index
    %7 = vector.load %arg4[%c0_6, %c0_7, %c0_8, %c0_9] : memref<1x1x32x32xbf16, #tpu.memory_space<vmem>>, vector<1x1x32x32xbf16>
    %8 = vector.shape_cast %7 : vector<1x1x32x32xbf16> to vector<32x32xbf16>
    %9 = vector.shape_cast %6 : vector<32x32xbf16> to vector<1x1x32x32xbf16>
    tpu.vector_store %arg4[%c0_6, %c0_7, %c0_8, %c0_9], %9 {strides = array<i32>} : memref<1x1x32x32xbf16, #tpu.memory_space<vmem>>, vector<1x1x32x32xbf16>,
    return
  }
  func.func @transform_0(%arg0: i32, %arg1: i32) -> (i32, i32, i32, i32) {
    %c0_i32 = arith.constant 0 : i32
    %c0_i32_0 = arith.constant 0 : i32
    %c0_i32_1 = arith.constant 0 : i32
    return %arg0, %arg1, %c0_i32, %c0_i32_0 : i32, i32, i32, i32
  }
  func.func @transform_1(%arg0: i32, %arg1: i32) -> (i32, i32) {
    %c0_i32 = arith.constant 0 : i32
    %c0_i32_0 = arith.constant 0 : i32
    %c0_i32_1 = arith.constant 0 : i32
    return %c0_i32, %c0_i32_0 : i32, i32
  }
  func.func @transform_2(%arg0: i32, %arg1: i32) -> (i32, i32, i32, i32) {
    %c0_i32 = arith.constant 0 : i32
    %c0_i32_0 = arith.constant 0 : i32
    %c0_i32_1 = arith.constant 0 : i32
    return %arg0, %arg1, %c0_i32, %c0_i32_0 : i32, i32, i32, i32
  }
}

module attributes {stable_mosaic.version = 11 : i64} {
  func.func @_conv2_kernel(%arg0: i32, %arg1: i32, %arg2: memref<1x1x32x32xbf16, #tpu.memory_space<vmem>>, %arg3: memref<4x32x16xbf16, #tpu.memory_space<vmem>>, %arg4: memref<1x16xf32, #tpu.memory_space<vmem>>, %arg5: memref<1x24x16xf32, #tpu.memory_space<vmem>>, %arg6: memref<24x16xf32, #tpu.memory_space<vmem>>) attributes {dimension_semantics = [#tpu.dimension_semantics<parallel>, #tpu.dimension_semantics<parallel>], iteration_bounds = array<i64: 2, 1>, scalar_prefetch = 0 : i64, scratch_operands = 1 : i64, tpu.core_type = #tpu.core_type<tc>, window_params = [{transform_indices = @transform_0, window_bounds = array<i64: 1, 1, 32, 32>}, {pipeline_mode = #tpu.pipeline_mode<synchronous>, transform_indices = @transform_1, window_bounds = array<i64: 4, 32, 16>}, {pipeline_mode = #tpu.pipeline_mode<synchronous>, transform_indices = @transform_2, window_bounds = array<i64: 1, 16>}, {transform_indices = @transform_3, window_bounds = array<i64: 1, 24, 16>}]} {
    %c0 = arith.constant 0 : index
    %c0_0 = arith.constant 0 : index
    %c0_1 = arith.constant 0 : index
    %c0_2 = arith.constant 0 : index
    %0 = vector.load %arg2[%c0, %c0_0, %c0_1, %c0_2] : memref<1x1x32x32xbf16, #tpu.memory_space<vmem>>, vector<1x1x24x32xbf16>
    %1 = vector.shape_cast %0 : vector<1x1x24x32xbf16> to vector<24x32xbf16>
    %c0_3 = arith.constant 0 : index
    %c0_4 = arith.constant 0 : index
    %c0_5 = arith.constant 0 : index
    %2 = vector.load %arg3[%c0_3, %c0_4, %c0_5] : memref<4x32x16xbf16, #tpu.memory_space<vmem>>, vector<1x32x16xbf16>
    %3 = vector.shape_cast %2 : vector<1x32x16xbf16> to vector<32x16xbf16>
    %cst = arith.constant dense<0.000000e+00> : vector<24x16xf32>
    %4 = tpu.matmul %1, %3, %cst {dimension_numbers = #tpu.dot_dimension_numbers<[1], [0], [0], [1], [0, 0, 1, 1], [], []>} : vector<24x32xbf16>, vector<32x16xbf16>, vector<24x16xf32> -> vector<24x16xf32>
    %c0_6 = arith.constant 0 : index
    %c0_7 = arith.constant 0 : index
    %5 = vector.load %arg6[%c0_6, %c0_7] : memref<24x16xf32, #tpu.memory_space<vmem>>, vector<24x16xf32>
    tpu.vector_store %arg6[%c0_6, %c0_7], %4 {strides = array<i32>} : memref<24x16xf32, #tpu.memory_space<vmem>>, vector<24x16xf32>,
    %c0_8 = arith.constant 0 : index
    %c0_9 = arith.constant 0 : index
    %6 = vector.load %arg6[%c0_8, %c0_9] : memref<24x16xf32, #tpu.memory_space<vmem>>, vector<24x16xf32>
    %c0_10 = arith.constant 0 : index
    %c0_11 = arith.constant 0 : index
    %c1 = arith.constant 1 : index
    %c0_12 = arith.constant 0 : index
    %7 = vector.load %arg2[%c0_10, %c0_11, %c1, %c0_12] : memref<1x1x32x32xbf16, #tpu.memory_space<vmem>>, vector<1x1x24x32xbf16>
    %8 = vector.shape_cast %7 : vector<1x1x24x32xbf16> to vector<24x32xbf16>
    %c1_13 = arith.constant 1 : index
    %c0_14 = arith.constant 0 : index
    %c0_15 = arith.constant 0 : index
    %9 = vector.load %arg3[%c1_13, %c0_14, %c0_15] : memref<4x32x16xbf16, #tpu.memory_space<vmem>>, vector<1x32x16xbf16>
    %10 = vector.shape_cast %9 : vector<1x32x16xbf16> to vector<32x16xbf16>
    %cst_16 = arith.constant dense<0.000000e+00> : vector<24x16xf32>
    %11 = tpu.matmul %8, %10, %cst_16 {dimension_numbers = #tpu.dot_dimension_numbers<[1], [0], [0], [1], [0, 0, 1, 1], [], []>} : vector<24x32xbf16>, vector<32x16xbf16>, vector<24x16xf32> -> vector<24x16xf32>
    %12 = arith.addf %6, %11 : vector<24x16xf32>
    %c0_17 = arith.constant 0 : index
    %c0_18 = arith.constant 0 : index
    %13 = vector.load %arg6[%c0_17, %c0_18] : memref<24x16xf32, #tpu.memory_space<vmem>>, vector<24x16xf32>
    tpu.vector_store %arg6[%c0_17, %c0_18], %12 {strides = array<i32>} : memref<24x16xf32, #tpu.memory_space<vmem>>, vector<24x16xf32>,
    %c0_19 = arith.constant 0 : index
    %c0_20 = arith.constant 0 : index
    %14 = vector.load %arg6[%c0_19, %c0_20] : memref<24x16xf32, #tpu.memory_space<vmem>>, vector<24x16xf32>
    %c0_21 = arith.constant 0 : index
    %c0_22 = arith.constant 0 : index
    %c5 = arith.constant 5 : index
    %c0_23 = arith.constant 0 : index
    %15 = vector.load %arg2[%c0_21, %c0_22, %c5, %c0_23] : memref<1x1x32x32xbf16, #tpu.memory_space<vmem>>, vector<1x1x24x32xbf16>
    %16 = vector.shape_cast %15 : vector<1x1x24x32xbf16> to vector<24x32xbf16>
    %c2 = arith.constant 2 : index
    %c0_24 = arith.constant 0 : index
    %c0_25 = arith.constant 0 : index
    %17 = vector.load %arg3[%c2, %c0_24, %c0_25] : memref<4x32x16xbf16, #tpu.memory_space<vmem>>, vector<1x32x16xbf16>
    %18 = vector.shape_cast %17 : vector<1x32x16xbf16> to vector<32x16xbf16>
    %cst_26 = arith.constant dense<0.000000e+00> : vector<24x16xf32>
    %19 = tpu.matmul %16, %18, %cst_26 {dimension_numbers = #tpu.dot_dimension_numbers<[1], [0], [0], [1], [0, 0, 1, 1], [], []>} : vector<24x32xbf16>, vector<32x16xbf16>, vector<24x16xf32> -> vector<24x16xf32>
    %20 = arith.addf %14, %19 : vector<24x16xf32>
    %c0_27 = arith.constant 0 : index
    %c0_28 = arith.constant 0 : index
    %21 = vector.load %arg6[%c0_27, %c0_28] : memref<24x16xf32, #tpu.memory_space<vmem>>, vector<24x16xf32>
    tpu.vector_store %arg6[%c0_27, %c0_28], %20 {strides = array<i32>} : memref<24x16xf32, #tpu.memory_space<vmem>>, vector<24x16xf32>,
    %c0_29 = arith.constant 0 : index
    %c0_30 = arith.constant 0 : index
    %22 = vector.load %arg6[%c0_29, %c0_30] : memref<24x16xf32, #tpu.memory_space<vmem>>, vector<24x16xf32>
    %c0_31 = arith.constant 0 : index
    %c0_32 = arith.constant 0 : index
    %c6 = arith.constant 6 : index
    %c0_33 = arith.constant 0 : index
    %23 = vector.load %arg2[%c0_31, %c0_32, %c6, %c0_33] : memref<1x1x32x32xbf16, #tpu.memory_space<vmem>>, vector<1x1x24x32xbf16>
    %24 = vector.shape_cast %23 : vector<1x1x24x32xbf16> to vector<24x32xbf16>
    %c3 = arith.constant 3 : index
    %c0_34 = arith.constant 0 : index
    %c0_35 = arith.constant 0 : index
    %25 = vector.load %arg3[%c3, %c0_34, %c0_35] : memref<4x32x16xbf16, #tpu.memory_space<vmem>>, vector<1x32x16xbf16>
    %26 = vector.shape_cast %25 : vector<1x32x16xbf16> to vector<32x16xbf16>
    %cst_36 = arith.constant dense<0.000000e+00> : vector<24x16xf32>
    %27 = tpu.matmul %24, %26, %cst_36 {dimension_numbers = #tpu.dot_dimension_numbers<[1], [0], [0], [1], [0, 0, 1, 1], [], []>} : vector<24x32xbf16>, vector<32x16xbf16>, vector<24x16xf32> -> vector<24x16xf32>
    %28 = arith.addf %22, %27 : vector<24x16xf32>
    %c0_37 = arith.constant 0 : index
    %c0_38 = arith.constant 0 : index
    %29 = vector.load %arg6[%c0_37, %c0_38] : memref<24x16xf32, #tpu.memory_space<vmem>>, vector<24x16xf32>
    tpu.vector_store %arg6[%c0_37, %c0_38], %28 {strides = array<i32>} : memref<24x16xf32, #tpu.memory_space<vmem>>, vector<24x16xf32>,
    %c0_39 = arith.constant 0 : index
    %c0_40 = arith.constant 0 : index
    %30 = vector.load %arg6[%c0_39, %c0_40] : memref<24x16xf32, #tpu.memory_space<vmem>>, vector<24x16xf32>
    %c0_41 = arith.constant 0 : index
    %c0_42 = arith.constant 0 : index
    %31 = vector.load %arg4[%c0_41, %c0_42] : memref<1x16xf32, #tpu.memory_space<vmem>>, vector<1x16xf32>
    %32 = vector.broadcast %31 : vector<1x16xf32> to vector<24x16xf32>
    %33 = arith.addf %30, %32 : vector<24x16xf32>
    %cst_43 = arith.constant 0.000000e+00 : f32
    %34 = vector.broadcast %cst_43 : f32 to vector<24x16xf32>
    %35 = arith.maximumf %33, %34 : vector<24x16xf32>
    %c0_44 = arith.constant 0 : index
    %c0_45 = arith.constant 0 : index
    %c0_46 = arith.constant 0 : index
    %36 = vector.load %arg5[%c0_44, %c0_45, %c0_46] : memref<1x24x16xf32, #tpu.memory_space<vmem>>, vector<1x24x16xf32>
    %37 = vector.shape_cast %36 : vector<1x24x16xf32> to vector<24x16xf32>
    %38 = vector.shape_cast %35 : vector<24x16xf32> to vector<1x24x16xf32>
    tpu.vector_store %arg5[%c0_44, %c0_45, %c0_46], %38 {strides = array<i32>} : memref<1x24x16xf32, #tpu.memory_space<vmem>>, vector<1x24x16xf32>,
    return
  }
  func.func @transform_0(%arg0: i32, %arg1: i32) -> (i32, i32, i32, i32) {
    %c0_i32 = arith.constant 0 : i32
    %c0_i32_0 = arith.constant 0 : i32
    %c0_i32_1 = arith.constant 0 : i32
    return %arg0, %arg1, %c0_i32, %c0_i32_0 : i32, i32, i32, i32
  }
  func.func @transform_1(%arg0: i32, %arg1: i32) -> (i32, i32, i32) {
    %c0_i32 = arith.constant 0 : i32
    %c0_i32_0 = arith.constant 0 : i32
    %c0_i32_1 = arith.constant 0 : i32
    %c0_i32_2 = arith.constant 0 : i32
    return %c0_i32, %c0_i32_0, %c0_i32_1 : i32, i32, i32
  }
  func.func @transform_2(%arg0: i32, %arg1: i32) -> (i32, i32) {
    %c0_i32 = arith.constant 0 : i32
    %c0_i32_0 = arith.constant 0 : i32
    %c0_i32_1 = arith.constant 0 : i32
    return %c0_i32, %c0_i32_0 : i32, i32
  }
  func.func @transform_3(%arg0: i32, %arg1: i32) -> (i32, i32, i32) {
    %c0_i32 = arith.constant 0 : i32
    %c0_i32_0 = arith.constant 0 : i32
    return %arg0, %arg1, %c0_i32 : i32, i32, i32
  }
}

</mosaic_0001>

<bundles_post_ra>
// kernel: patch_embed_forward.2
= control target key start
LH: loop header
LB: loop body
LE: loop exit
PB: predicated region body
PF: predicated region fallthrough
CT: control target
= control target key end

     0   :  { %s529_s9 = smov 0   ;;  %s531_s10 = smov 0   ;;  %s577_s0 = inlined_call_operand.vmem [shape: bf16[2,1,32,80], index: 0, kind: input, shape index: {}]   ;;  %s578_s1 = inlined_call_operand.vmem [shape: bf16[80,32], index: 1, kind: input, shape index: {}]   ;;  %s579_s2 = inlined_call_operand.vmem [shape: bf16[2,1,32,32], index: 2, kind: output, shape index: {}]  }
   0x1   :  { %s533_s11 = smov 0  }
   0x2 LB: > { %s24_s12 = sadd.s32 1, %s508_s10  ;;  %p412_p0 = scmp.ge.s32.totalorder %s512_s11, 1  ;;  %s512_s11 = sphi %s533_s11, %s12_s11   ;;  %s508_s10 = sphi %s531_s10, %s581_s10   ;;  %s504_s9 = sphi %s529_s9, %s580_s9  }
   0x3   : > { %p26_p1 = scmp.ge.s32.totalorder %s24_s12, 2  ;;  %p132_p2 = scmp.lt.s32.totalorder %s512_s11, 3 }
   0x5   : > { %s583_s12 = smov (%p26_p1, %s24_s12), 0  ;;  %p133_p3 = pnand %p412_p0, %p132_p2 }
   0x6   : > { %v483_v0 = vld [vmem:[%s578_s1] sm:$0xff] (!%p133_p3)   ;;  %p162_p4 = scmp.lt.s32.totalorder (!%p133_p3), %s504_s9, 1  ;;  %v484_v1 = vld [vmem:[%s578_s1 + $0x8] sm:$0xff] (!%p133_p3)   ;;  %v485_v2 = vld [vmem:[%s578_s1 + $0x10] sm:$0xff] (!%p133_p3)   ;;  %vm235_vm0 = vcmask (!%p133_p3), 654336   ;;  %vm311_vm1 = vcmask (!%p133_p3), 257024  }
   0x7   : > { %136 = sbr.rel (%p133_p3) target bundleno = 247 (0xf7), region = 28  ;;  %445 = vmatprep.subr.bf16.mxu0 (!%p133_p3), %v483_v0  ;;  %v486_v4 = vld [vmem:[%s578_s1 + $0x18] sm:$0xff] (!%p133_p3)   ;;  %v487_v5 = vld [vmem:[%s578_s1 + $0x20] sm:$0xff] (!%p133_p3)  }
   0x8   : > { %446 = vmatpush3.bf16.msra.mxu0 (!%p133_p3), %v483_v0 }
   0x9   : > { %447 = vmatprep.subr.bf16.mxu0 (!%p133_p3), %v484_v1 }
   0xc   : > { %448 = vmatpush3.bf16.msra.mxu0 (!%p133_p3), %v484_v1 }
   0xd   : > { %449 = vmatprep.subr.bf16.mxu0 (!%p133_p3), %v485_v2 }
   0xe   : > { %s585_s9 = smov (!%p162_p4, %s504_s9), 1 }
   0xf   : > { %s432_s19 = sshll.u32 %s585_s9, 4 }
  0x10   : > { %s170_s22 = scalar_lea.vmem %s577_s0, %s432_s19  ;;  %450 = vmatpush3.bf16.msra.mxu0 %v485_v2  ;;  %s179_s29 = scalar_lea.vmem %s579_s2, %s432_s19 }
  0x11   : > { %v488_v3 = vld [vmem:[%s170_s22] sm:$0xff]   ;;  %451 = vmatprep.subr.bf16.mxu0 %v486_v4  ;;  %v489_v6 = vld [vmem:[%s170_s22 + $0x8] sm:$0xff]  }
  0x12   : > { %455 = vmatprep.mubr.msk.bf16.mxu0 %vm235_vm0, %v488_v3 }
  0x14   : > { %452 = vmatpush3.bf16.msra.mxu0 %v486_v4 }
  0x15   : > { %453 = vmatprep.subr.bf16.mxu0 %v487_v5 }
  0x18   : > { %454 = vmatpush3.bf16.msra.mxu0 %v487_v5 }
  0x1b   : > { %456 = vmatmul.mubr.msk.bf16.vlgmr.msra.gmra.mrb[0].mxu0 %vm235_vm0, %v489_v6 }
  0xee   : > { %v457_v7 = vpop.f32.mrb[0].mxu0 }
  0xef   : > { %v293_v8 = vmax.f32 %v457_v7, 0.0  ;;  %v276_v9 = vpop.f32.mrb[1].mxu0 }
  0xf0   : > { %v291_v10 = vmax.f32 %v276_v9, 0.0  ;;  %v458_v11 = vpop.f32.mrb[2].mxu0 }
  0xf1   : > { %v436_v12 = vpack.c.bf16 %v293_v8, %v293_v8  ;;  %v294_v13 = vmax.f32 %v458_v11, 0.0  ;;  %v279_v14 = vpop.f32.mrb[3].mxu0 }
  0xf2   : > { %v434_v15 = vpack.c.bf16 %v291_v10, %v291_v10  ;;  %v292_v16 = vmax.f32 %v279_v14, 0.0 }
  0xf3   : > { %314 = vst.msk [vmem:[%s179_s29 + $0x8] sm:$0xf] %vm311_vm1, %v436_v12  ;;  %v437_v17 = vpack.c.bf16 %v294_v13, %v294_v13 }
  0xf4   : > { %312 = vst.msk [vmem:[%s179_s29] sm:$0xf] %vm311_vm1, %v434_v15  ;;  %v435_v18 = vpack.c.bf16 %v292_v16, %v292_v16 }
  0xf5   : > { %315 = vst.msk [vmem:[%s179_s29 + $0xc] sm:$0xf] %vm311_vm1, %v437_v17 }
  0xf6   : > { %313 = vst.msk [vmem:[%s179_s29 + $0x4] sm:$0xf] %vm311_vm1, %v435_v18 }
  0xf7 PF: > { %s12_s11 = sadd.s32 1, %s512_s11   ;;  %s580_s9 = smov %s508_s10 }
  0xf8   : > { %p9_p5 = scmp.ge.s32.totalorder %s12_s11, 4   ;;  %s581_s10 = smov %s583_s12 }
  0xfa   :  { %11 = sbr.rel (!%p9_p5) target bundleno = 2 (0x2), region = 58 }

// kernel: patch_embed_forward.3
= control target key start
LH: loop header
LB: loop body
LE: loop exit
PB: predicated region body
PF: predicated region fallthrough
CT: control target
= control target key end

     0   :  { %s905_s12 = smov 0   ;;  %s907_s13 = smov 0   ;;  %s1004_s0 = inlined_call_operand.vmem [shape: bf16[2,1,32,32], index: 0, kind: input, shape index: {}]   ;;  %s1005_s1 = inlined_call_operand.vmem [shape: bf16[4,32,16], index: 1, kind: input, shape index: {}]   ;;  %s1006_s2 = inlined_call_operand.vmem [shape: f32[1,16], index: 2, kind: input, shape index: {}]   ;;  %s1007_s3 = inlined_call_operand.vmem [shape: f32[2,24,16], index: 3, kind: output, shape index: {}]  }
   0x1   :  { %s909_s14 = smov 0  }
   0x2 LB: > { %s25_s15 = sadd.s32 1, %s879_s13  ;;  %p728_p0 = scmp.ge.s32.totalorder %s883_s14, 1  ;;  %s883_s14 = sphi %s909_s14, %s13_s14   ;;  %s879_s13 = sphi %s907_s13, %s1009_s13   ;;  %s875_s12 = sphi %s905_s12, %s1008_s12  }
   0x3   : > { %p27_p1 = scmp.ge.s32.totalorder %s25_s15, 2  ;;  %p157_p2 = scmp.lt.s32.totalorder %s883_s14, 3 }
   0x5   : > { %s1011_s15 = smov (%p27_p1, %s25_s15), 0  ;;  %p158_p3 = pnand %p728_p0, %p157_p2 }
   0x6   : > { %v845_v0 = vld [vmem:[%s1005_s1] sm:$0xff] (!%p158_p3)   ;;  %p189_p4 = scmp.lt.s32.totalorder (!%p158_p3), %s875_s12, 1  ;;  %v846_v1 = vld [vmem:[%s1005_s1 + $0x8] sm:$0xff] (!%p158_p3)   ;;  %v847_v2 = vld [vmem:[%s1005_s1 + $0x10] sm:$0xff] (!%p158_p3)   ;;  %vm236_vm0 = vcmask (!%p158_p3), 261120   ;;  %vm539_vm3 = vcmask (!%p158_p3), 1044480  }
   0x7   : > { %161 = sbr.rel (%p158_p3) target bundleno = 277 (0x115), region = 32  ;;  %788 = vmatprep.subr.bf16.mxu0 (!%p158_p3), %v845_v0  ;;  %v850_v3 = vld [vmem:[%s1005_s1 + $0x18] sm:$0xff] (!%p158_p3)   ;;  %796 = vmatprep.subr.bf16.mxu1 (!%p158_p3), %v847_v2  ;;  %v853_v4 = vld [vmem:[%s1005_s1 + $0x20] sm:$0xff] (!%p158_p3)   ;;  %vm317_vm1 = vsmask.f32 (!%p158_p3), 7424  ;;  %v854_v9 = vld [vmem:[%s1005_s1 + $0x28] sm:$0xff] (!%p158_p3)  }
   0x8   : > { %789 = vmatpush3.bf16.msra.mxu0 (!%p158_p3), %v845_v0  ;;  %797 = vmatpush3.bf16.msra.mxu1 (!%p158_p3), %v847_v2  ;;  %vm427_vm2 = vsmask.f32 (!%p158_p3), 5376  ;;  %v857_v18 = vld [vmem:[%s1005_s1 + $0x30] sm:$0xff] (!%p158_p3)   ;;  %v858_v25 = vld [vmem:[%s1005_s1 + $0x38] sm:$0xff] (!%p158_p3)   ;;  %vm291_vm4 = vcmask (!%p158_p3), 130048  }
   0x9   : > { %790 = vmatprep.subr.bf16.mxu0 (!%p158_p3), %v846_v1  ;;  %798 = vmatprep.subr.bf16.mxu1 (!%p158_p3), %v850_v3 }
   0xc   : > { %791 = vmatpush3.bf16.msra.mxu0 (!%p158_p3), %v846_v1  ;;  %799 = vmatpush3.bf16.msra.mxu1 (!%p158_p3), %v850_v3 }
   0xd   : > { %804 = vmatprep.subr.bf16.mxu0 (!%p158_p3), %v853_v4  ;;  %812 = vmatprep.subr.bf16.mxu1 (!%p158_p3), %v857_v18 }
   0xe   : > { %s1013_s12 = smov (!%p189_p4, %s875_s12), 1 }
   0xf   : > { %s771_s24 = sshll.u32 %s1013_s12, 4  ;;  %s820_s9 = smul.u32 24, %s1013_s12 }
  0x10   : > { %s944_s29 = scalar_lea.vmem %s1004_s0, %s771_s24 }
  0x11   : > { %v848_v5 = vld [vmem:[%s944_s29] sm:$0xff]   ;;  %v849_v6 = vld [vmem:[%s944_s29 + $0x8] ss:$0 sps:$4 sm:$0xff]   ;;  %s206_s18 = scalar_lea.vmem %s1007_s3, %s820_s9 }
  0x12   : > { %792 = vmatprep.mubr.msk.bf16.mxu0 %vm236_vm0, %v848_v5  ;;  %v851_v7 = vld [vmem:[%s944_s29] sm:$0xff]   ;;  %v852_v8 = vld [vmem:[%s944_s29 + $0x8] sm:$0x1f]  }
  0x13   : > { %793 = vmatmul.mubr.msk.bf16.vlgmr.msra.gmra.mrb[0].mxu0 %vm236_vm0, %v849_v6  ;;  %v319_v10 = vshrl.u32 %v851_v7, 16  ;;  %v321_v11 = vshll.u32 %v851_v7, 16  ;;  %v326_v12 = vshll.u32 %v852_v8, 16  ;;  %v330_v13 = vshrl.u32 %v852_v8, 16  ;;  %v855_v14 = vld [vmem:[%s944_s29] sm:$0xfc]  }
  0x14   : > { %805 = vmatpush3.bf16.msra.mxu0 %v853_v4  ;;  %v856_v15 = vld [vmem:[%s944_s29 + $0x8] sm:$0x7f]   ;;  %v429_v19 = vshrl.u32 %v855_v14, 16  ;;  %v432_v20 = vshll.u32 %v855_v14, 16  ;;  %v859_v31 = vld [vmem:[%s944_s29] sm:$0xf8]  }
  0x15   : > { %806 = vmatprep.subr.bf16.mxu0 %v854_v9  ;;  %v323_v16 = vrot.slane %v321_v11, 1  ;;  %v328_v17 = vrot.slane %v326_v12, 1  ;;  %v437_v21 = vshrl.u32 %v856_v15, 16  ;;  %v440_v22 = vshll.u32 %v856_v15, 16  ;;  %v860_v32 = vld [vmem:[%s944_s29 + $0x8] sm:$0x7f]  }
  0x16   : > { %v431_v26 = vrot.slane %v429_v19, 2  ;;  %v434_v27 = vrot.slane %v432_v20, 3  ;;  %v540_v35 = vrot.slane %v859_v31, 3  ;;  %v541_v36 = vrot.slane %v860_v32, 3 }
  0x17   : > { %v324_v23 = vor.u32 %v323_v16, %v319_v10  ;;  %v332_v24 = vor.u32 %v330_v13, %v328_v17  ;;  %v439_v28 = vrot.slane %v437_v21, 2  ;;  %v442_v29 = vrot.slane %v440_v22, 3 }
  0x18   : > { %807 = vmatpush3.bf16.msra.mxu0 %v854_v9  ;;  %v435_v33 = vor.u32 %v434_v27, %v431_v26  ;;  %v542_v38 = vsel %vm539_vm3, %v540_v35, %v541_v36  ;;  %v768_v9 = vld [vmem:[%s1006_s2] ss:$0 sm:$0xff] }
  0x19   : > { %v329_v30 = vsel %vm317_vm1, %v324_v23, %v328_v17  ;;  %v443_v34 = vor.u32 %v442_v29, %v439_v28 }
  0x1a   : > { %800 = vmatprep.mubr.msk.bf16.mxu1 %vm236_vm0, %v329_v30 }
  0x1b   : > { %801 = vmatmul.mubr.msk.bf16.vlgmr.msra.gmra.mrb[0].mxu1 %vm236_vm0, %v332_v24  ;;  %v444_v37 = vsel %vm427_vm2, %v435_v33, %v443_v34 }
  0x1c   : > { %813 = vmatpush3.bf16.msra.mxu1 %v857_v18  ;;  %808 = vmatprep.mubr.msk.bf16.mxu0 %vm236_vm0, %v444_v37 }
  0x1d   : > { %814 = vmatprep.subr.bf16.mxu1 %v858_v25  ;;  %809 = vmatmul.mubr.msk.bf16.vlgmr.msra.gmra.mrb[4].mxu0 %vm236_vm0, %v443_v34 }
  0x1e   : > { %816 = vmatprep.mubr.msk.bf16.mxu1 %vm236_vm0, %v542_v38 }
  0x20   : > { %815 = vmatpush3.bf16.msra.mxu1 %v858_v25 }
  0x23   : > { %817 = vmatmul.mubr.msk.bf16.vlgmr.msra.gmra.mrb[4].mxu1 %vm236_vm0, %v541_v36 }
  0xe6   : > { %v794_v39 = vpop.f32.mrb[0].mxu0 }
  0xe7   : > { %294 = vst.msk [vmem:[#allocation2 + $0x10] sm:$0xff] %vm291_vm4, %v794_v39  ;;  %v277_v40 = vpop.f32.mrb[1].mxu0 }
  0xe8   : > { %292 = vst.msk [vmem:[#allocation2] sm:$0xff] %vm291_vm4, %v277_v40  ;;  %v795_v41 = vpop.f32.mrb[2].mxu0 }
  0xe9   : > { %v280_v42 = vpop.f32.mrb[3].mxu0 }
  0xea   : > { %293 = vst.msk [vmem:[#allocation2 + $0x8] sm:$0xff] %vm291_vm4, %v280_v42 }
  0xee   : > { %v297_v43 = vld [vmem:[#allocation2 + $0x10] sm:$0xff]  ;;  %v802_v44 = vpop.f32.mrb[0].mxu1 }
  0xef   : > { %v295_v45 = vld [vmem:[#allocation2] sm:$0xff]  ;;  %v401_v46 = vadd.f32 %v802_v44, %v297_v43  ;;  %v385_v47 = vpop.f32.mrb[1].mxu1 }
  0xf0   : > { %v399_v48 = vadd.f32 %v385_v47, %v295_v45  ;;  %v803_v49 = vpop.f32.mrb[2].mxu1  ;;  %v810_v52 = vpop.f32.mrb[4].mxu0 }
  0xf1   : > { %v296_v50 = vld [vmem:[#allocation2 + $0x8] sm:$0xff]  ;;  %404 = vst.msk [vmem:[#allocation2 + $0x10] sm:$0xff] %vm291_vm4, %v401_v46  ;;  %v388_v51 = vpop.f32.mrb[3].mxu1  ;;  %v497_v54 = vpop.f32.mrb[5].mxu0 }
  0xf2   : > { %402 = vst.msk [vmem:[#allocation2] sm:$0xff] %vm291_vm4, %v399_v48  ;;  %v400_v53 = vadd.f32 %v388_v51, %v296_v50  ;;  %v811_v55 = vpop.f32.mrb[6].mxu0 }
  0xf3   : > { %v500_v56 = vpop.f32.mrb[7].mxu0 }
  0xf4   : > { %403 = vst.msk [vmem:[#allocation2 + $0x8] sm:$0xff] %vm291_vm4, %v400_v53 }
  0xf6   : > { %v818_v57 = vpop.f32.mrb[4].mxu1 }
  0xf7   : > { %v595_v58 = vpop.f32.mrb[5].mxu1 }
  0xf8   : > { %v407_v59 = vld [vmem:[#allocation2 + $0x10] sm:$0xff]  ;;  %v819_v60 = vpop.f32.mrb[6].mxu1 }
  0xf9   : > { %v513_v61 = vadd.f32 %v810_v52, %v407_v59  ;;  %v405_v62 = vld [vmem:[#allocation2] sm:$0xff]  ;;  %v598_v63 = vpop.f32.mrb[7].mxu1 }
  0xfa   : > { %v511_v0 = vadd.f32 %v497_v54, %v405_v62 }
  0xfb   : > { %516 = vst.msk [vmem:[#allocation2 + $0x10] sm:$0xff] %vm291_vm4, %v513_v61  ;;  %v406_v1 = vld [vmem:[#allocation2 + $0x8] sm:$0xff] }
  0xfc   : > { %514 = vst.msk [vmem:[#allocation2] sm:$0xff] %vm291_vm4, %v511_v0  ;;  %v512_v2 = vadd.f32 %v500_v56, %v406_v1 }
  0xfe   : > { %515 = vst.msk [vmem:[#allocation2 + $0x8] sm:$0xff] %vm291_vm4, %v512_v2 }
 0x102   : > { %v519_v3 = vld [vmem:[#allocation2 + $0x10] sm:$0xff] }
 0x103   : > { %v611_v4 = vadd.f32 %v818_v57, %v519_v3  ;;  %v517_v5 = vld [vmem:[#allocation2] sm:$0xff] }
 0x104   : > { %v609_v6 = vadd.f32 %v595_v58, %v517_v5 }
 0x105   : > { %614 = vst.msk [vmem:[#allocation2 + $0x10] sm:$0xff] %vm291_vm4, %v611_v4  ;;  %v518_v7 = vld [vmem:[#allocation2 + $0x8] sm:$0xff] }
 0x106   : > { %612 = vst.msk [vmem:[#allocation2] sm:$0xff] %vm291_vm4, %v609_v6  ;;  %v610_v8 = vadd.f32 %v598_v63, %v518_v7 }
 0x108   : > { %613 = vst.msk [vmem:[#allocation2 + $0x8] sm:$0xff] %vm291_vm4, %v610_v8 }
 0x10c   : > { %v617_v10 = vld [vmem:[#allocation2 + $0x10] sm:$0xff] }
 0x10d   : > { %v627_v11 = vadd.f32 %v768_v9, %v617_v10  ;;  %v615_v12 = vld [vmem:[#allocation2] sm:$0xff] }
 0x10e   : > { %v625_v13 = vadd.f32 %v768_v9, %v615_v12 }
 0x10f   : > { %v630_v14 = vmax.f32 %v627_v11, 0.0  ;;  %v616_v15 = vld [vmem:[#allocation2 + $0x8] sm:$0xff] }
 0x110   : > { %v628_v16 = vmax.f32 %v625_v13, 0.0  ;;  %v626_v17 = vadd.f32 %v768_v9, %v616_v15 }
 0x111   : > { %633 = vst.msk [vmem:[%s206_s18 + $0x10] sm:$0xff] %vm291_vm4, %v630_v14 }
 0x112   : > { %631 = vst.msk [vmem:[%s206_s18] sm:$0xff] %vm291_vm4, %v628_v16  ;;  %v629_v18 = vmax.f32 %v626_v17, 0.0 }
 0x114   : > { %632 = vst.msk [vmem:[%s206_s18 + $0x8] sm:$0xff] %vm291_vm4, %v629_v18 }
 0x115 PF: > { %s13_s14 = sadd.s32 1, %s883_s14   ;;  %s1008_s12 = smov %s879_s13 }
 0x116   : > { %p10_p5 = scmp.ge.s32.totalorder %s13_s14, 4   ;;  %s1009_s13 = smov %s1011_s15 }
 0x118   :  { %12 = sbr.rel (!%p10_p5) target bundleno = 2 (0x2), region = 65 }

</bundles_post_ra>
